<compile_context>
chip_gen: v7x
topology: tpu7x:2x2x1
jax: 0.10.0
libtpu: 0.0.40
codegen_flags: <defaults>
</compile_context>

<pallas_src>
import functools

import jax
import jax.numpy as jnp
from jax.experimental import pallas as pl
from jax.experimental.pallas import tpu as pltpu

# ---------------- scaled-down synthetic configuration ----------------
BATCH     = 2      # B
N_TILES   = 2      # n (second dim of the 5-D input)
IN_CH     = 3
IMG       = 16
STEM_CH   = 32     # scaled-down resnet conv1 out_channels (64)
INFEATURE = 128    # scaled-down resnet34 fc.in_features (512); lane-dense (=128)
HIDDEN    = 512    # nn.Linear(infeature*2, 512)
NC        = 10     # number of classes
NC_PAD    = 128    # lane-dense logits width (sliced back to NC in the wrapper)
BN_EPS    = 1e-5   # PyTorch BatchNorm default eps
K_RAW     = 9 * IN_CH                  # 27
K_PAD     = ((K_RAW + 7) // 8) * 8     # 32, sublane-aligned contraction dim
TILE_M    = 64     # rows per grid step; must divide n*Ho*Wo.  At real ResNet
                   # sizes use 512-1024 rows per tile.


# ---------------- in-kernel math helpers (f32 on the VPU/EUP) ----------------
def _mish(x):            # MishFunction.forward: x * tanh(softplus(x))
    sp = jnp.where(x > 20.0, x, jnp.log1p(jnp.exp(jnp.minimum(x, 20.0))))
    return x * jnp.tanh(sp)


# ---------------- fused backbone + head kernel ----------------
def _fused_kernel(p_ref, w1_ref, b1_ref, w2_ref, b2_ref,
                  f1m_ref, f1a_ref, f1b_ref, f2w_ref, f2b_ref,
                  o_ref, mx_sc, sum_sc, *, inv_spatial):
    t = pl.program_id(1)                           # tile index within this batch elem

    # ---- backbone: stem conv as im2col matmul (BN folded into w1/b1) + ReLU ----
    # NOTE: K=32 / N=32 underfill the MXU at this toy scale; at real ResNet
    # channel counts keep Cin*9 and Cout at multiples of 128 (do NOT pad K to
    # 128 here -- it would be 4x wasted patch DMA for no FLOP gain).
    y = jnp.dot(p_ref[...], w1_ref[...], preferred_element_type=jnp.float32)
    y = jnp.maximum(y + b1_ref[...], 0.0)
    # TODO(synk): resnet34 maxpool + layer1..layer4 BasicBlocks are not
    # reproduced; the backbone here is stem-conv -> 1x1 projection only.
    y = jnp.dot(y.astype(jnp.bfloat16), w2_ref[...],
                preferred_element_type=jnp.float32)
    y = jnp.maximum(y + b2_ref[...], 0.0)          # (TILE_M, 128) f32, stays on-chip

    # ---- AdaptiveConcatPool2d partials: running max / running sum -----------
    @pl.when(t == 0)
    def _():
        mx_sc[...] = jnp.full_like(mx_sc, -jnp.inf)
        sum_sc[...] = jnp.zeros_like(sum_sc)

    mx_sc[...] = jnp.maximum(mx_sc[...], jnp.max(y, axis=0, keepdims=True))
    sum_sc[...] = sum_sc[...] + jnp.sum(y, axis=0, keepdims=True)

    # ---- head: runs once per batch element, on its last tile ----------------
    @pl.when(t == pl.num_programs(1) - 1)
    def _():
        mx = mx_sc[...]                            # (1, 128) AdaptiveMaxPool2d(1)
        av = sum_sc[...] * inv_spatial             # (1, 128) AdaptiveAvgPool2d(1)
        # Linear(2*infeature, 512) without lane-concat: W1 split [max | avg].
        h = (jnp.dot(mx.astype(jnp.bfloat16), f1m_ref[...],
                     preferred_element_type=jnp.float32)
             + jnp.dot(av.astype(jnp.bfloat16), f1a_ref[...],
                       preferred_element_type=jnp.float32)
             + f1b_ref[...])
        h = _mish(h)                               # Mish in f32
        # BatchNorm1d(512) folded into Linear(512, nc); Dropout(0.5) = identity (eval).
        logits = jnp.dot(h.astype(jnp.bfloat16), f2w_ref[...],
                         preferred_element_type=jnp.float32) + f2b_ref[...]
        o_ref[0] = logits                          # lane-dense (1, NC_PAD) store


def _const_spec(shape):
    nd = len(shape)
    return pl.BlockSpec(shape, lambda b, t, _nd=nd: (0,) * _nd)


def pool_tile_net_forward(patches, meta, params):
    """patches: bf16 (B*n*Ho*Wo, K_PAD) im2col rows.  Returns (B, NC) f32 logits."""
    B, n, Ho, Wo = meta
    npb = n * Ho * Wo                               # spatial positions per batch elem
    assert npb % TILE_M == 0, (npb, TILE_M)
    tiles = npb // TILE_M                           # reduction steps per batch elem

    args = (patches,
            params["stem_w"], params["stem_b"],
            params["proj_w"], params["proj_b"],
            params["fc1_w_max"], params["fc1_w_avg"], params["fc1_b"],
            params["fc2_w"], params["fc2_b"])

    in_specs = [pl.BlockSpec((TILE_M, K_PAD),
                             lambda b, t, _tiles=tiles: (b * _tiles + t, 0))]
    in_specs += [_const_spec(a.shape) for a in args[1:]]

    out = pl.pallas_call(
        functools.partial(_fused_kernel, inv_spatial=1.0 / float(npb)),
        out_shape=jax.ShapeDtypeStruct((B, 1, NC_PAD), jnp.float32),
        grid=(B, tiles),
        in_specs=in_specs,
        # same output block across the tile axis -> written once on the last tile
        out_specs=pl.BlockSpec((1, 1, NC_PAD), lambda b, t: (b, 0, 0)),
        scratch_shapes=[pltpu.VMEM((1, INFEATURE), jnp.float32),   # running max
                        pltpu.VMEM((1, INFEATURE), jnp.float32)],  # running sum
        compiler_params=pltpu.CompilerParams(
            # batch axis sharded across v7x's 2 TensorCores; tile axis is the
            # pooling reduction.  Default 32 MiB scoped VMEM is ample here.
            dimension_semantics=("parallel", "arbitrary")),
    )(*args)
    return out.reshape(B, NC_PAD)[:, :NC]


# ---------------- data prep (done ONCE, outside the kernel) ----------------
def preprocess(x):
    """x: (B, n, C, H, W)  ->  bf16 im2col patches (B*n*Ho*Wo, K_PAD), meta."""
    B, n, C, H, W = x.shape
    x = x.reshape(B * n, C, H, W)                    # torch: x.view(-1, C, H, W)
    x = jnp.transpose(x, (0, 2, 3, 1))               # NCHW -> NHWC for TPU
    x = jnp.pad(x, ((0, 0), (1, 1), (1, 1), (0, 0))) # conv pad=1 (3x3, stride 2)
    Ho = (H + 2 - 3) // 2 + 1
    Wo = (W + 2 - 3) // 2 + 1
    cols = []
    for di in range(3):                              # static unroll at trace time
        for dj in range(3):
            cols.append(x[:, di:di + 2 * Ho:2, dj:dj + 2 * Wo:2, :])
    patches = jnp.concatenate(cols, axis=-1)         # (Bn, Ho, Wo, 27)
    patches = patches.reshape(B * n * Ho * Wo, K_RAW)
    patches = jnp.pad(patches, ((0, 0), (0, K_PAD - K_RAW)))   # K 27 -> 32
    # TODO(synk): at real image sizes move this im2col gather in-kernel
    # (manual make_async_copy of the 3 input row-strips per tile) instead of
    # materializing a lane-sparse expanded patch slab in HBM.
    return patches.astype(jnp.bfloat16), (B, n, Ho, Wo)


# ---------------- pure-JAX reference (mirrors kernel math) ----------------
def reference_forward(patches, meta, params):
    B, n, Ho, Wo = meta
    f32 = lambda a: a.astype(jnp.float32)
    bfr = lambda a: a.astype(jnp.bfloat16).astype(jnp.float32)
    y = jnp.maximum(f32(patches) @ f32(params["stem_w"]) + params["stem_b"], 0.0)
    y = jnp.maximum(bfr(y) @ f32(params["proj_w"]) + params["proj_b"], 0.0)
    # torch: view(-1, n, C, h, w).permute(0,2,1,3,4).view(-1, C, h*n, w) only
    # rearranges spatial layout; the head pools over the ENTIRE spatial extent,
    # so grouping all n*Ho*Wo positions per batch element is equivalent.
    feat = y.reshape(B, n * Ho * Wo, INFEATURE)
    mx, av = jnp.max(feat, axis=1), jnp.mean(feat, axis=1)
    h = (bfr(mx) @ f32(params["fc1_w_max"]) + bfr(av) @ f32(params["fc1_w_avg"])
         + params["fc1_b"])
    h = _mish(h)
    logits = bfr(h) @ f32(params["fc2_w"]) + params["fc2_b"]
    return logits[:, :NC]


# ---------------- deterministic synthetic parameters (BN folded offline) ----------------
def _bn_fold(key, c, eps):
    kg, kb, km, kv = jax.random.split(key, 4)
    gamma = 1.0 + 0.1 * jax.random.normal(kg, (c,), jnp.float32)
    beta = 0.1 * jax.random.normal(kb, (c,), jnp.float32)
    mean = 0.1 * jax.random.normal(km, (c,), jnp.float32)
    var = jax.random.uniform(kv, (c,), jnp.float32, minval=0.5, maxval=1.5)
    scale = gamma / jnp.sqrt(var + eps)
    bias = beta - mean * scale
    return scale, bias


def init_params(key):
    ks = jax.random.split(key, 9)
    p = {}
    # conv1 (3x3, stride 2, no bias) as (kh*kw*Cin, Cout) im2col weight; fold bn1.
    # TODO(synk): porting real PyTorch conv1 weights (Cout,Cin,kh,kw) requires a
    # matching (kh,kw,Cin)->K permute or results will be silently wrong.
    w = 0.1 * jax.random.normal(ks[0], (K_RAW, STEM_CH), jnp.float32)
    s, b = _bn_fold(ks[1], STEM_CH, BN_EPS)
    p["stem_w"] = jnp.pad(w * s[None, :],
                          ((0, K_PAD - K_RAW), (0, 0))).astype(jnp.bfloat16)
    p["stem_b"] = b.reshape(1, STEM_CH)
    # 1x1 projection conv to INFEATURE channels; fold its BN scale.
    w = 0.1 * jax.random.normal(ks[2], (STEM_CH, INFEATURE), jnp.float32)
    s, b = _bn_fold(ks[3], INFEATURE, BN_EPS)
    p["proj_w"] = (w * s[None, :]).astype(jnp.bfloat16)
    p["proj_b"] = b.reshape(1, INFEATURE)
    # head Linear(2*infeature, 512): rows split [max | avg] (no concat in-kernel).
    w1 = 0.05 * jax.random.normal(ks[4], (2 * INFEATURE, HIDDEN), jnp.float32)
    p["fc1_w_max"] = w1[:INFEATURE].astype(jnp.bfloat16)
    p["fc1_w_avg"] = w1[INFEATURE:].astype(jnp.bfloat16)
    p["fc1_b"] = (0.05 * jax.random.normal(ks[5], (HIDDEN,), jnp.float32)
                  ).reshape(1, HIDDEN)
    # BatchNorm1d(512) folded into Linear(512, nc):
    #   (mish(h)*s + b) @ W2 + bias2  ==  mish(h) @ (s[:,None]*W2) + (b @ W2 + bias2)
    # Output padded to NC_PAD lanes for an unmasked lane-dense store.
    s, b = _bn_fold(ks[6], HIDDEN, BN_EPS)
    w2 = 0.05 * jax.random.normal(ks[7], (HIDDEN, NC), jnp.float32)
    bias2 = 0.05 * jax.random.normal(ks[8], (NC,), jnp.float32)
    p["fc2_w"] = jnp.pad(s[:, None] * w2,
                         ((0, 0), (0, NC_PAD - NC))).astype(jnp.bfloat16)
    p["fc2_b"] = jnp.pad(b @ w2 + bias2, (0, NC_PAD - NC)).reshape(1, NC_PAD)
    return p


if __name__ == "__main__":
    key = jax.random.PRNGKey(0)
    kp, kx = jax.random.split(key)
    params = init_params(kp)
    # PoolTileNet.forward takes a single 5-D tensor (B, n, C, H, W)
    x = jax.random.normal(kx, (BATCH, N_TILES, IN_CH, IMG, IMG), jnp.float32)

    patches, meta = preprocess(x)                    # one-time data prep
    out = jax.block_until_ready(pool_tile_net_forward(patches, meta, params))
    ref = reference_forward(patches, meta, params)

    assert out.shape == (BATCH, NC), out.shape
    assert bool(jnp.all(jnp.isfinite(out)))
    assert bool(jnp.allclose(out, ref, atol=1e-1, rtol=1e-1)), (
        "max abs diff vs reference: %f" % float(jnp.max(jnp.abs(out - ref))))
    print("KERNEL_OK")
</pallas_src>

<mosaic_0001>
module attributes {stable_mosaic.version = 11 : i64} {
  func.func @_fused_kernel(%arg0: i32, %arg1: i32, %arg2: memref<64x32xbf16, #tpu.memory_space<vmem>>, %arg3: memref<32x32xbf16, #tpu.memory_space<vmem>>, %arg4: memref<1x32xf32, #tpu.memory_space<vmem>>, %arg5: memref<32x128xbf16, #tpu.memory_space<vmem>>, %arg6: memref<1x128xf32, #tpu.memory_space<vmem>>, %arg7: memref<128x512xbf16, #tpu.memory_space<vmem>>, %arg8: memref<128x512xbf16, #tpu.memory_space<vmem>>, %arg9: memref<1x512xf32, #tpu.memory_space<vmem>>, %arg10: memref<512x128xbf16, #tpu.memory_space<vmem>>, %arg11: memref<1x128xf32, #tpu.memory_space<vmem>>, %arg12: memref<1x1x128xf32, #tpu.memory_space<vmem>>, %arg13: memref<1x128xf32, #tpu.memory_space<vmem>>, %arg14: memref<1x128xf32, #tpu.memory_space<vmem>>) attributes {dimension_semantics = [#tpu.dimension_semantics<parallel>, #tpu.dimension_semantics<arbitrary>], iteration_bounds = array<i64: 2, 2>, scalar_prefetch = 0 : i64, scratch_operands = 2 : i64, tpu.core_type = #tpu.core_type<tc>, window_params = [{transform_indices = @transform_0, window_bounds = array<i64: 64, 32>}, {pipeline_mode = #tpu.pipeline_mode<synchronous>, transform_indices = @transform_1, window_bounds = array<i64: 32, 32>}, {pipeline_mode = #tpu.pipeline_mode<synchronous>, transform_indices = @transform_2, window_bounds = array<i64: 1, 32>}, {pipeline_mode = #tpu.pipeline_mode<synchronous>, transform_indices = @transform_3, window_bounds = array<i64: 32, 128>}, {pipeline_mode = #tpu.pipeline_mode<synchronous>, transform_indices = @transform_4, window_bounds = array<i64: 1, 128>}, {pipeline_mode = #tpu.pipeline_mode<synchronous>, transform_indices = @transform_5, window_bounds = array<i64: 128, 512>}, {pipeline_mode = #tpu.pipeline_mode<synchronous>, transform_indices = @transform_6, window_bounds = array<i64: 128, 512>}, {pipeline_mode = #tpu.pipeline_mode<synchronous>, transform_indices = @transform_7, window_bounds = array<i64: 1, 512>}, {pipeline_mode = #tpu.pipeline_mode<synchronous>, transform_indices = @transform_8, window_bounds = array<i64: 512, 128>}, {pipeline_mode = #tpu.pipeline_mode<synchronous>, transform_indices = @transform_9, window_bounds = array<i64: 1, 128>}, {transform_indices = @transform_10, window_bounds = array<i64: 1, 1, 128>}]} {
    %c0 = arith.constant 0 : index
    %c0_0 = arith.constant 0 : index
    %0 = vector.load %arg2[%c0, %c0_0] : memref<64x32xbf16, #tpu.memory_space<vmem>>, vector<64x32xbf16>
    %c0_1 = arith.constant 0 : index
    %c0_2 = arith.constant 0 : index
    %1 = vector.load %arg3[%c0_1, %c0_2] : memref<32x32xbf16, #tpu.memory_space<vmem>>, vector<32x32xbf16>
    %cst = arith.constant dense<0.000000e+00> : vector<64x32xf32>
    %2 = tpu.matmul %0, %1, %cst {dimension_numbers = #tpu.dot_dimension_numbers<[1], [0], [0], [1], [0, 0, 1, 1], [], []>} : vector<64x32xbf16>, vector<32x32xbf16>, vector<64x32xf32> -> vector<64x32xf32>
    %c0_3 = arith.constant 0 : index
    %c0_4 = arith.constant 0 : index
    %3 = vector.load %arg4[%c0_3, %c0_4] : memref<1x32xf32, #tpu.memory_space<vmem>>, vector<1x32xf32>
    %4 = vector.broadcast %3 : vector<1x32xf32> to vector<64x32xf32>
    %5 = arith.addf %2, %4 : vector<64x32xf32>
    %cst_5 = arith.constant 0.000000e+00 : f32
    %6 = vector.broadcast %cst_5 : f32 to vector<64x32xf32>
    %7 = arith.maximumf %5, %6 : vector<64x32xf32>
    %8 = arith.truncf %7 : vector<64x32xf32> to vector<64x32xbf16>
    %c0_6 = arith.constant 0 : index
    %c0_7 = arith.constant 0 : index
    %9 = vector.load %arg5[%c0_6, %c0_7] : memref<32x128xbf16, #tpu.memory_space<vmem>>, vector<32x128xbf16>
    %cst_8 = arith.constant dense<0.000000e+00> : vector<64x128xf32>
    %10 = tpu.matmul %8, %9, %cst_8 {dimension_numbers = #tpu.dot_dimension_numbers<[1], [0], [0], [1], [0, 0, 1, 1], [], []>} : vector<64x32xbf16>, vector<32x128xbf16>, vector<64x128xf32> -> vector<64x128xf32>
    %c0_9 = arith.constant 0 : index
    %c0_10 = arith.constant 0 : index
    %11 = vector.load %arg6[%c0_9, %c0_10] : memref<1x128xf32, #tpu.memory_space<vmem>>, vector<1x128xf32>
    %12 = vector.broadcast %11 : vector<1x128xf32> to vector<64x128xf32>
    %13 = arith.addf %10, %12 : vector<64x128xf32>
    %cst_11 = arith.constant 0.000000e+00 : f32
    %14 = vector.broadcast %cst_11 : f32 to vector<64x128xf32>
    %15 = arith.maximumf %13, %14 : vector<64x128xf32>
    %c0_i32 = arith.constant 0 : i32
    %16 = arith.cmpi eq, %arg1, %c0_i32 : i32
    %17 = arith.extui %16 : i1 to i32
    %c0_i32_12 = arith.constant 0 : i32
    %18 = arith.cmpi ne, %17, %c0_i32_12 : i32
    scf.if %18 {
      %cst_24 = arith.constant 0xFF800000 : f32
      %32 = vector.broadcast %cst_24 : f32 to vector<1x128xf32>
      %c0_25 = arith.constant 0 : index
      %c0_26 = arith.constant 0 : index
      %33 = vector.load %arg13[%c0_25, %c0_26] : memref<1x128xf32, #tpu.memory_space<vmem>>, vector<1x128xf32>
      tpu.vector_store %arg13[%c0_25, %c0_26], %32 {strides = array<i32>} : memref<1x128xf32, #tpu.memory_space<vmem>>, vector<1x128xf32>,
      %cst_27 = arith.constant 0.000000e+00 : f32
      %34 = vector.broadcast %cst_27 : f32 to vector<1x128xf32>
      %c0_28 = arith.constant 0 : index
      %c0_29 = arith.constant 0 : index
      %35 = vector.load %arg14[%c0_28, %c0_29] : memref<1x128xf32, #tpu.memory_space<vmem>>, vector<1x128xf32>
      tpu.vector_store %arg14[%c0_28, %c0_29], %34 {strides = array<i32>} : memref<1x128xf32, #tpu.memory_space<vmem>>, vector<1x128xf32>,
    } else {
    }
    %c0_13 = arith.constant 0 : index
    %c0_14 = arith.constant 0 : index
    %19 = vector.load %arg13[%c0_13, %c0_14] : memref<1x128xf32, #tpu.memory_space<vmem>>, vector<1x128xf32>
    %cst_15 = arith.constant dense<0xFF800000> : vector<128xf32>
    %20 = vector.multi_reduction <maximumf>, %15, %cst_15 [0] : vector<64x128xf32> to vector<128xf32>
    %21 = vector.shape_cast %20 : vector<128xf32> to vector<1x128xf32>
    %22 = arith.maximumf %19, %21 : vector<1x128xf32>
    %c0_16 = arith.constant 0 : index
    %c0_17 = arith.constant 0 : index
    %23 = vector.load %arg13[%c0_16, %c0_17] : memref<1x128xf32, #tpu.memory_space<vmem>>, vector<1x128xf32>
    tpu.vector_store %arg13[%c0_16, %c0_17], %22 {strides = array<i32>} : memref<1x128xf32, #tpu.memory_space<vmem>>, vector<1x128xf32>,
    %c0_18 = arith.constant 0 : index
    %c0_19 = arith.constant 0 : index
    %24 = vector.load %arg14[%c0_18, %c0_19] : memref<1x128xf32, #tpu.memory_space<vmem>>, vector<1x128xf32>
    %cst_20 = arith.constant dense<0.000000e+00> : vector<128xf32>
    %25 = vector.multi_reduction <add>, %15, %cst_20 [0] : vector<64x128xf32> to vector<128xf32>
    %26 = vector.shape_cast %25 : vector<128xf32> to vector<1x128xf32>
    %27 = arith.addf %24, %26 : vector<1x128xf32>
    %c0_21 = arith.constant 0 : index
    %c0_22 = arith.constant 0 : index
    %28 = vector.load %arg14[%c0_21, %c0_22] : memref<1x128xf32, #tpu.memory_space<vmem>>, vector<1x128xf32>
    tpu.vector_store %arg14[%c0_21, %c0_22], %27 {strides = array<i32>} : memref<1x128xf32, #tpu.memory_space<vmem>>, vector<1x128xf32>,
    %c1_i32 = arith.constant 1 : i32
    %29 = arith.cmpi eq, %arg1, %c1_i32 : i32
    %30 = arith.extui %29 : i1 to i32
    %c0_i32_23 = arith.constant 0 : i32
    %31 = arith.cmpi ne, %30, %c0_i32_23 : i32
    scf.if %31 {
      %c0_24 = arith.constant 0 : index
      %c0_25 = arith.constant 0 : index
      %32 = vector.load %arg13[%c0_24, %c0_25] : memref<1x128xf32, #tpu.memory_space<vmem>>, vector<1x128xf32>
      %c0_26 = arith.constant 0 : index
      %c0_27 = arith.constant 0 : index
      %33 = vector.load %arg14[%c0_26, %c0_27] : memref<1x128xf32, #tpu.memory_space<vmem>>, vector<1x128xf32>
      %cst_28 = arith.constant 7.812500e-03 : f32
      %34 = vector.broadcast %cst_28 : f32 to vector<1x128xf32>
      %35 = arith.mulf %33, %34 : vector<1x128xf32>
      %36 = arith.truncf %32 : vector<1x128xf32> to vector<1x128xbf16>
      %c0_29 = arith.constant 0 : index
      %c0_30 = arith.constant 0 : index
      %37 = vector.load %arg7[%c0_29, %c0_30] : memref<128x512xbf16, #tpu.memory_space<vmem>>, vector<128x512xbf16>
      %cst_31 = arith.constant dense<0.000000e+00> : vector<1x512xf32>
      %38 = tpu.matmul %36, %37, %cst_31 {dimension_numbers = #tpu.dot_dimension_numbers<[1], [0], [0], [1], [0, 0, 1, 1], [], []>} : vector<1x128xbf16>, vector<128x512xbf16>, vector<1x512xf32> -> vector<1x512xf32>
      %39 = arith.truncf %35 : vector<1x128xf32> to vector<1x128xbf16>
      %c0_32 = arith.constant 0 : index
      %c0_33 = arith.constant 0 : index
      %40 = vector.load %arg8[%c0_32, %c0_33] : memref<128x512xbf16, #tpu.memory_space<vmem>>, vector<128x512xbf16>
      %cst_34 = arith.constant dense<0.000000e+00> : vector<1x512xf32>
      %41 = tpu.matmul %39, %40, %cst_34 {dimension_numbers = #tpu.dot_dimension_numbers<[1], [0], [0], [1], [0, 0, 1, 1], [], []>} : vector<1x128xbf16>, vector<128x512xbf16>, vector<1x512xf32> -> vector<1x512xf32>
      %42 = arith.addf %38, %41 : vector<1x512xf32>
      %c0_35 = arith.constant 0 : index
      %c0_36 = arith.constant 0 : index
      %43 = vector.load %arg9[%c0_35, %c0_36] : memref<1x512xf32, #tpu.memory_space<vmem>>, vector<1x512xf32>
      %44 = arith.addf %42, %43 : vector<1x512xf32>
      %cst_37 = arith.constant 2.000000e+01 : f32
      %45 = vector.broadcast %cst_37 : f32 to vector<1x512xf32>
      %46 = arith.cmpf ogt, %44, %45 : vector<1x512xf32>
      %cst_38 = arith.constant 2.000000e+01 : f32
      %47 = vector.broadcast %cst_38 : f32 to vector<1x512xf32>
      %48 = arith.minimumf %44, %47 : vector<1x512xf32>
      %49 = math.exp %48 : vector<1x512xf32>
      %50 = math.log1p %49 : vector<1x512xf32>
      %51 = arith.select %46, %44, %50 : vector<1x512xi1>, vector<1x512xf32>
      %52 = math.tanh %51 : vector<1x512xf32>
      %53 = arith.mulf %44, %52 : vector<1x512xf32>
      %54 = arith.truncf %53 : vector<1x512xf32> to vector<1x512xbf16>
      %c0_39 = arith.constant 0 : index
      %c0_40 = arith.constant 0 : index
      %55 = vector.load %arg10[%c0_39, %c0_40] : memref<512x128xbf16, #tpu.memory_space<vmem>>, vector<512x128xbf16>
      %cst_41 = arith.constant dense<0.000000e+00> : vector<1x128xf32>
      %56 = tpu.matmul %54, %55, %cst_41 {dimension_numbers = #tpu.dot_dimension_numbers<[1], [0], [0], [1], [0, 0, 1, 1], [], []>} : vector<1x512xbf16>, vector<512x128xbf16>, vector<1x128xf32> -> vector<1x128xf32>
      %c0_42 = arith.constant 0 : index
      %c0_43 = arith.constant 0 : index
      %57 = vector.load %arg11[%c0_42, %c0_43] : memref<1x128xf32, #tpu.memory_space<vmem>>, vector<1x128xf32>
      %58 = arith.addf %56, %57 : vector<1x128xf32>
      %c0_44 = arith.constant 0 : index
      %c0_45 = arith.constant 0 : index
      %c0_46 = arith.constant 0 : index
      %59 = vector.load %arg12[%c0_44, %c0_45, %c0_46] : memref<1x1x128xf32, #tpu.memory_space<vmem>>, vector<1x1x128xf32>
      %60 = vector.shape_cast %59 : vector<1x1x128xf32> to vector<1x128xf32>
      %61 = vector.shape_cast %58 : vector<1x128xf32> to vector<1x1x128xf32>
      tpu.vector_store %arg12[%c0_44, %c0_45, %c0_46], %61 {strides = array<i32>} : memref<1x1x128xf32, #tpu.memory_space<vmem>>, vector<1x1x128xf32>,
    } else {
    }
    return
  }
  func.func @transform_0(%arg0: i32, %arg1: i32) -> (i32, i32) {
    %c2_i32 = arith.constant 2 : i32
    %0 = arith.muli %arg0, %c2_i32 : i32
    %1 = arith.addi %0, %arg1 : i32
    %c0_i32 = arith.constant 0 : i32
    %c0_i32_0 = arith.constant 0 : i32
    return %1, %c0_i32 : i32, i32
  }
  func.func @transform_1(%arg0: i32, %arg1: i32) -> (i32, i32) {
    %c0_i32 = arith.constant 0 : i32
    %c0_i32_0 = arith.constant 0 : i32
    %c0_i32_1 = arith.constant 0 : i32
    return %c0_i32, %c0_i32_0 : i32, i32
  }
  func.func @transform_2(%arg0: i32, %arg1: i32) -> (i32, i32) {
    %c0_i32 = arith.constant 0 : i32
    %c0_i32_0 = arith.constant 0 : i32
    %c0_i32_1 = arith.constant 0 : i32
    return %c0_i32, %c0_i32_0 : i32, i32
  }
  func.func @transform_3(%arg0: i32, %arg1: i32) -> (i32, i32) {
    %c0_i32 = arith.constant 0 : i32
    %c0_i32_0 = arith.constant 0 : i32
    %c0_i32_1 = arith.constant 0 : i32
    return %c0_i32, %c0_i32_0 : i32, i32
  }
  func.func @transform_4(%arg0: i32, %arg1: i32) -> (i32, i32) {
    %c0_i32 = arith.constant 0 : i32
    %c0_i32_0 = arith.constant 0 : i32
    %c0_i32_1 = arith.constant 0 : i32
    return %c0_i32, %c0_i32_0 : i32, i32
  }
  func.func @transform_5(%arg0: i32, %arg1: i32) -> (i32, i32) {
    %c0_i32 = arith.constant 0 : i32
    %c0_i32_0 = arith.constant 0 : i32
    %c0_i32_1 = arith.constant 0 : i32
    return %c0_i32, %c0_i32_0 : i32, i32
  }
  func.func @transform_6(%arg0: i32, %arg1: i32) -> (i32, i32) {
    %c0_i32 = arith.constant 0 : i32
    %c0_i32_0 = arith.constant 0 : i32
    %c0_i32_1 = arith.constant 0 : i32
    return %c0_i32, %c0_i32_0 : i32, i32
  }
  func.func @transform_7(%arg0: i32, %arg1: i32) -> (i32, i32) {
    %c0_i32 = arith.constant 0 : i32
    %c0_i32_0 = arith.constant 0 : i32
    %c0_i32_1 = arith.constant 0 : i32
    return %c0_i32, %c0_i32_0 : i32, i32
  }
  func.func @transform_8(%arg0: i32, %arg1: i32) -> (i32, i32) {
    %c0_i32 = arith.constant 0 : i32
    %c0_i32_0 = arith.constant 0 : i32
    %c0_i32_1 = arith.constant 0 : i32
    return %c0_i32, %c0_i32_0 : i32, i32
  }
  func.func @transform_9(%arg0: i32, %arg1: i32) -> (i32, i32) {
    %c0_i32 = arith.constant 0 : i32
    %c0_i32_0 = arith.constant 0 : i32
    %c0_i32_1 = arith.constant 0 : i32
    return %c0_i32, %c0_i32_0 : i32, i32
  }
  func.func @transform_10(%arg0: i32, %arg1: i32) -> (i32, i32, i32) {
    %c0_i32 = arith.constant 0 : i32
    %c0_i32_0 = arith.constant 0 : i32
    %c0_i32_1 = arith.constant 0 : i32
    return %arg0, %c0_i32, %c0_i32_0 : i32, i32, i32
  }
}

</mosaic_0001>

<bundles_post_ra>
// kernel: tpu_custom_call.1
= control target key start
LH: loop header
LB: loop body
LE: loop exit
PB: predicated region body
PF: predicated region fallthrough
CT: control target
= control target key end

     0   :  { %s2849_s0 = inlined_call_operand.vmem [shape: bf16[256,32], index: 0, kind: input, shape index: {}]   ;;  %s2850_s1 = inlined_call_operand.vmem [shape: bf16[32,32], index: 1, kind: input, shape index: {}]   ;;  %s2851_s2 = inlined_call_operand.vmem [shape: f32[1,32], index: 2, kind: input, shape index: {}]   ;;  %s2852_s3 = inlined_call_operand.vmem [shape: bf16[32,128], index: 3, kind: input, shape index: {}]   ;;  %s2853_s4 = inlined_call_operand.vmem [shape: f32[1,128], index: 4, kind: input, shape index: {}]   ;;  %s2854_s5 = inlined_call_operand.hbm [shape: bf16[128,512], index: 5, kind: input, shape index: {}]   ;;  %s2855_s6 = inlined_call_operand.hbm [shape: bf16[128,512], index: 6, kind: input, shape index: {}]   ;;  %s2856_s7 = inlined_call_operand.vmem [shape: f32[1,512], index: 7, kind: input, shape index: {}]   ;;  %s2857_s8 = inlined_call_operand.hbm [shape: bf16[512,128], index: 8, kind: input, shape index: {}]   ;;  %s2858_s9 = inlined_call_operand.vmem [shape: f32[1,128], index: 9, kind: input, shape index: {}]   ;;  %s2859_s10 = inlined_call_operand.hbm [shape: f32[2,1,128], index: 10, kind: output, shape index: {}]  }
   0x1   :  { %2875 = sst [smem:[#allocation24_spill]] %s2859_s10 }
   0x2   :  { %15 = vsyncpa [#allocation5], 0 }
   0x3   :  { %16 = vsyncpa [#allocation8], 0 }
   0x4   :  { %17 = vsyncpa [#allocation6], 0 }
   0x5   :  { %19 = vsyncpa [#allocation6 + $0x1], 0  ;;  %s2554_s13 = smov 0   ;;  %s2556_s14 = smov 0  }
   0x6   :  { %s2558_s15 = smov 0   ;;  %s2560_s16 = smov 0  }
   0x7   :  { %s2562_s17 = smov 0   ;;  %s2564_s18 = smov 0  }
   0x8   :  { %s2566_s19 = smov 0   ;;  %s2568_s20 = smov 0  }
   0x9 LB: > { %2876 = sst [smem:[#allocation14_spill]] %s2458_s13  ;;  %s1816_s21 = sadd.s32 4294967295, %s2486_s20   ;;  %s2486_s20 = sphi %s2568_s20, %s25_s20   ;;  %s2482_s19 = sphi %s2566_s19, %s2906_s19   ;;  %s2478_s18 = sphi %s2564_s18, %s2905_s18   ;;  %s2474_s17 = sphi %s2562_s17, %s2904_s17   ;;  %s2470_s16 = sphi %s2560_s16, %s2903_s16   ;;  %s2466_s15 = sphi %s2558_s15, %s2902_s15   ;;  %s2462_s14 = sphi %s2556_s14, %s2908_s14   ;;  %s2458_s13 = sphi %s2554_s13, %s2907_s13  }
   0xa   : > { %2877 = sst [smem:[#allocation15_spill]] %s2466_s15  ;;  %s1817_s22 = sadd.s32 4294967294, %s2486_s20  }
   0xb   : > { %2878 = sst [smem:[#allocation16_spill]] %s2478_s18  ;;  %s34_s23 = sadd.s32 1, %s2478_s18 }
   0xc   : > { %2879 = sst [smem:[#allocation17_spill]] %s2482_s19  ;;  %s37_s24 = sadd.s32 1, %s2482_s19 }
   0xd   : > { %2880 = sst [smem:[#allocation18_spill]] %s2486_s20  ;;  %p35_p0 = scmp.ge.s32.totalorder %s34_s23, 2 }
   0xe   : > { %s263_s25 = sadd.s32 1, %s2466_s15  ;;  %p273_p1 = scmp.ne.s32.totalorder %s2466_s15, %s2462_s14 }
   0xf   : > { %p274_p2 = scmp.eq.s32.totalorder %s1816_s21, 3  ;;  %s2910_s23 = smov (%p35_p0, %s34_s23), 0 }
  0x10   : > { %2881 = sst [smem:[#allocation19_spill]] %s2910_s23  ;;  %s2912_s24 = smov (!%p35_p0, %s37_s24), %s2482_s19 }
  0x11   : > { %p2604_p3 = por %p274_p2, %p273_p1  ;;  %p279_p4 = scmp.ne.s32.totalorder %s2462_s14, %s2458_s13 }
  0x12   : > { %p39_p5 = scmp.ge.s32.totalorder %s2912_s24, 2  ;;  %p280_p6 = scmp.eq.s32.totalorder %s1817_s22, 3 }
  0x13   : > { %s2882_s26 = scalar_select %p2604_p3, 1, 0 }
  0x14   : > { %p1820_p7 = scmp.ge.s32.totalorder %s2486_s20, 1  ;;  %p287_p8 = scmp.lt.s32.totalorder %s2486_s20, 5 }
  0x15   : > { %2883 = sst [smem:[#allocation20_spill]] %s2882_s26  ;;  %s2914_s24 = smov (%p39_p5, %s2912_s24), 0 }
  0x16   : > { %2884 = sst [smem:[#allocation21_spill]] %s2914_s24  ;;  %p2614_p9 = por %p280_p6, %p279_p4 }
  0x17   : > { %p2618_p10 = pnand %p1820_p7, %p287_p8  ;;  %s260_s29 = ssub.s32 %s2482_s19, %s2914_s24 }
  0x18   : > { %s2885_s27 = scalar_select %p2614_p9, 1, 0 }
  0x19   : > { %s2887_s28 = scalar_select %p2618_p10, 1, 0 }
  0x1a   : > { %2886 = sst [smem:[#allocation22_spill]] %s2885_s27  ;;  %p261_p11 = scmp.eq.s32.totalorder %s260_s29, 0 }
  0x1b   : > { %p2045_p12 = pneg %p2618_p10  ;;  %p2626_p13 = scmp.eq.s32.totalorder %s1816_s21, 0 }
  0x1c   : > { %s2631_s11 = scalar_select %p261_p11, %s2466_s15, %s263_s25  }
  0x1d   : > { %s2888_s30 = scalar_select %p2626_p13, 1, 0 }
  0x1e   : > { %2889 = sst [smem:[#allocation23_spill]] %s2631_s11  ;;  %p2635_p0 = pnand %p2626_p13, %p2045_p12 }
  0x1f   : > { %s2488_s22 = smov [#allocation7]   ;;  %s2300_s19 = scalar_lea.hbm %s2855_s6, 4096 }
  0x20   : > { %s324_s23 = sshll.u32 %s2488_s22, 4  ;;  %p2301_p1 = scmp.ne.s32.totalorder %s2855_s6, %s2300_s19  ;;  %s325_s23 = int_to_ptr.vmem [resolvable:$true] %s324_s23 }
  0x21   : > { %p2647_p2 = pneg %p2635_p0  ;;  %p2307_p6 = scmp.lt.u32.totalorder %s2300_s19, %s2855_s6 }
  0x23   : > { %p2303_p4 = pnand %p2647_p2, %p2301_p1 }
  0x25   : > { %p2304_p5 = pneg %p2303_p4 }
  0x27   : > { %p2309_p7 = pnand %p2307_p6, %p2304_p5 }
  0x29   : > { %2312 = shalt.err (!%p2309_p7)
}
  0x2a   : > { %s2313_s24 = scalar_lea.vmem %s325_s23, 4096  ;;  %p2321_p9 = scmp.lt.s32.totalorder %s325_s23, %s325_s23 }
  0x2b   : > { %p2314_p8 = scmp.ne.s32.totalorder %s325_s23, %s2313_s24  ;;  %p2322_p3 = scmp.lt.s32.totalorder %s2313_s24, %s2313_s24 }
  0x2d   : > { %p2316_p11 = pnand %p2314_p8, %p2647_p2  ;;  %p2323_p13 = por %p2322_p3, %p2321_p9 }
  0x2f   : > { %p2317_p12 = pneg %p2316_p11 }
  0x31   : > { %p2324_p10 = pnand %p2323_p13, %p2317_p12 }
  0x33   : > { %2327 = shalt.err (!%p2324_p10)
}
  0x34   : > { %s2489_s18 = smov 256   ;;  %s2490_s29 = smov 16  }
  0x35   : > { %2051 = dma.hbm_to_vmem [thread:$0]  (!%p2635_p0), %s2855_s6, 4096, %s325_s23, [#allocation8], %s2489_s18, %s2489_s18, %s2490_s29  }
  0x36   : > { %s2491_s21 = smov [#allocation4]   ;;  %s2492_s15 = smov [#allocation9]  }
  0x37   : > { %s311_s22 = sshll.u32 %s2491_s21, 4  ;;  %s340_s27 = sshll.u32 %s2492_s15, 4  ;;  %s312_s22 = int_to_ptr.vmem [resolvable:$true] %s311_s22  ;;  %s2663_s27 = int_to_ptr.vmem [resolvable:$true] %s340_s27 }
  0x38   : > { %s2328_s20 = scalar_lea.hbm %s2854_s5, 4096 }
  0x39   : > { %p2329_p3 = scmp.ne.s32.totalorder %s2854_s5, %s2328_s20  ;;  %p2335_p13 = scmp.lt.u32.totalorder %s2328_s20, %s2854_s5 }
  0x3b   : > { %p2331_p9 = pnand %p2329_p3, %p2647_p2 }
  0x3d   : > { %p2332_p10 = pneg %p2331_p9 }
  0x3f   : > { %p2337_p1 = pnand %p2335_p13, %p2332_p10 }
  0x41   : > { %2340 = shalt.err (!%p2337_p1)
}
  0x42   : > { %s2341_s15 = scalar_lea.vmem %s312_s22, 4096  ;;  %p2349_p7 = scmp.lt.s32.totalorder %s312_s22, %s312_s22 }
  0x43   : > { %p2342_p4 = scmp.ne.s32.totalorder %s312_s22, %s2341_s15  ;;  %p2350_p8 = scmp.lt.s32.totalorder %s2341_s15, %s2341_s15 }
  0x45   : > { %p2344_p5 = pnand %p2342_p4, %p2647_p2  ;;  %p2351_p11 = por %p2350_p8, %p2349_p7 }
  0x47   : > { %p2345_p6 = pneg %p2344_p5 }
  0x49   : > { %p2352_p12 = pnand %p2351_p11, %p2345_p6 }
  0x4b   : > { %2355 = shalt.err (!%p2352_p12)
}
  0x4c   : > { %2048 = dma.hbm_to_vmem [thread:$0]  (!%p2635_p0), %s2854_s5, 4096, %s312_s22, [#allocation5], %s2489_s18, %s2489_s18, %s2490_s29  }
  0x4d   : > { %s2356_s19 = scalar_lea.hbm %s2857_s8, 4096 }
  0x4e   : > { %p2357_p3 = scmp.ne.s32.totalorder %s2857_s8, %s2356_s19  ;;  %p2363_p13 = scmp.lt.u32.totalorder %s2356_s19, %s2857_s8 }
  0x50   : > { %p2359_p9 = pnand %p2357_p3, %p2647_p2 }
  0x52   : > { %p2360_p10 = pneg %p2359_p9 }
  0x54   : > { %p2365_p1 = pnand %p2363_p13, %p2360_p10 }
  0x56   : > { %2368 = shalt.err (!%p2365_p1)
}
  0x57   : > { %s2369_s18 = scalar_lea.vmem %s2663_s27, 4096  ;;  %p2377_p7 = scmp.lt.s32.totalorder %s2663_s27, %s2663_s27 }
  0x58   : > { %p2370_p4 = scmp.ne.s32.totalorder %s2663_s27, %s2369_s18  ;;  %p2378_p8 = scmp.lt.s32.totalorder %s2369_s18, %s2369_s18 }
  0x5a   : > { %p2372_p5 = pnand %p2370_p4, %p2647_p2  ;;  %p2379_p11 = por %p2378_p8, %p2377_p7 }
  0x5c   : > { %p2373_p6 = pneg %p2372_p5 }
  0x5e   : > { %p2380_p12 = pnand %p2379_p11, %p2373_p6 }
  0x60   : > { %2383 = shalt.err (!%p2380_p12)
}
  0x61   : > { %s2493_s29 = smov 64   ;;  %s2494_s22 = smov 4  }
  0x62   : > { %2054 = dma.hbm_to_vmem [thread:$0]  (!%p2635_p0), %s2857_s8, 4096, %s2663_s27, [#allocation8], %s2493_s29, %s2493_s29, %s2494_s22  }
  0x63   : > { %p2892_p3 = scmp.ne.s32.totalorder %s2887_s28, 0 }
  0x64   : > { %p2893_p2 = scmp.ne.s32.totalorder (!%p2892_p3), %s2888_s30, 0 }
  0x65   : > { %372 = sbr.rel (%p2892_p3) target bundleno = 1154 (0x482), region = 60 }
  0x6c   : > { %2445 = dma.done.wait (%p2893_p2), [#allocation5], 4096  }
  0x6d   : > { %2447 = vsyncadd (%p2893_p2), [#allocation5], 4294963200 }
  0x6e   : > { %2449 = dma.done.wait (%p2893_p2), [#allocation8], 8192  }
  0x6f   : > { %2451 = vsyncadd (%p2893_p2), [#allocation8], 4294959104  ;;  %s417_s12 = sand.u32 1, %s2462_s14   ;;  %s1829_s27 = sshll.u32 %s2474_s17, 1  ;;  %v2140_v0 = vld [vmem:[%s2850_s1] sm:$0xff]   ;;  %v2141_v1 = vld [vmem:[%s2850_s1 + $0x8] sm:$0xff]  }
  0x70   : > { %s420_s25 = sadd.s32 %s2470_s16, %s1829_s27  ;;  %vm481_vm0 = vcmask 261120   ;;  %2007 = vmatprep.subr.bf16.mxu0 %v2140_v0  ;;  %v2146_v6 = vld [vmem:[%s2852_s3] sm:$0xff]   ;;  %v2147_v7 = vld [vmem:[%s2852_s3 + $0x8] sm:$0xff]   ;;  %p1850_p9 = scmp.ne.s32.totalorder %s2470_s16, 0 }
  0x71   : > { %s1830_s28 = sshll.u32 %s420_s25, 3  ;;  %2008 = vmatpush3.bf16.msra.mxu0 %v2140_v0  ;;  %2019 = vmatprep.subr.bf16.mxu1 %v2146_v6  ;;  %v1832_v8 = vld [vmem:[%s2851_s2] ss:$0 sm:$0xff]  ;;  %v2495_v62 = vmov (!%p1850_p9), -inf   ;;  %v2496_v63 = vmov (!%p1850_p9), 0.0  }
  0x72   : > { %p422_p0 = scmp.lt.s32.totalorder %s1830_s28, 31  ;;  %2009 = vmatprep.subr.bf16.mxu0 %v2141_v1  ;;  %2020 = vmatpush3.bf16.msra.mxu1 %v2146_v6  ;;  %v1843_v37 = vld [vmem:[%s2853_s4] ss:$0 sm:$0xff]  ;;  %683 = vst [vmem:[#allocation2] sm:$0x1] (!%p1850_p9), %v2495_v62 }
  0x73   : > { %2021 = vmatprep.subr.bf16.mxu1 %v2147_v7  ;;  %684 = vst [vmem:[#allocation3] sm:$0x1] (!%p1850_p9), %v2496_v63 }
  0x74   : > { %s2916_s28 = smov (!%p422_p0, %s1830_s28), 31 }
  0x75   : > { %s1831_s26 = sshll.u32 %s2916_s28, 2  ;;  %2010 = vmatpush3.bf16.msra.mxu0 %v2141_v1  ;;  %s2750_s28 = scalar_lea.vmem [#allocation10], %s417_s12 }
  0x76   : > { %s425_s11 = scalar_lea.vmem %s2849_s0, %s1831_s26  ;;  %2022 = vmatpush3.bf16.msra.mxu1 %v2147_v7 }
  0x77   : > { %v2142_v2 = vld [vmem:[%s425_s11] sm:$0xff]   ;;  %v2143_v3 = vld [vmem:[%s425_s11 + $0x8] sm:$0xff]   ;;  %v2144_v4 = vld [vmem:[%s425_s11 + $0x10] sm:$0xff]  }
  0x78   : > { %2011 = vmatprep.mubr.msk.bf16.mxu0 %vm481_vm0, %v2142_v2  ;;  %v2145_v5 = vld [vmem:[%s425_s11 + $0x18] sm:$0xff]  }
  0x79   : > { %2012 = vmatmul.mubr.msk.bf16.vlgmr.msra.gmra.mrb[0].mxu0 %vm481_vm0, %v2143_v3 }
  0x7a   : > { %2015 = vmatprep.mubr.msk.bf16.mxu0 %vm481_vm0, %v2144_v4 }
  0x81   : > { %2016 = vmatmul.mubr.msk.bf16.gmra.mrb[4].mxu0 %vm481_vm0, %v2145_v5 }
 0x14c   : > { %v2013_v9 = vpop.f32.mrb[0].mxu0 }
 0x14d   : > { %v537_v10 = vadd.f32 %v2013_v9, %v1832_v8  ;;  %v528_v11 = vpop.f32.mrb[1].mxu0 }
 0x14e   : > { %v529_v12 = vadd.f32 %v1832_v8, %v528_v11  ;;  %v2014_v13 = vpop.f32.mrb[2].mxu0 }
 0x14f   : > { %v540_v14 = vadd.f32 %v2014_v13, %v1832_v8  ;;  %v531_v15 = vpop.f32.mrb[3].mxu0  ;;  %v561_v17 = vmax.f32 %v537_v10, 0.0 }
 0x150   : > { %v532_v16 = vadd.f32 %v1832_v8, %v531_v15  ;;  %v559_v19 = vmax.f32 %v529_v12, 0.0 }
 0x151   : > { %v562_v18 = vmax.f32 %v540_v14, 0.0 }
 0x152   : > { %v560_v20 = vmax.f32 %v532_v16, 0.0 }
 0x153   : > { %v568_v21 = vpack.c.bf16 %v562_v18, %v561_v17 }
 0x154   : > { %v2017_v22 = vpop.f32.mrb[4].mxu0  ;;  %v567_v23 = vpack.c.bf16 %v560_v20, %v559_v19 }
 0x155   : > { %v553_v24 = vadd.f32 %v2017_v22, %v1832_v8  ;;  %v544_v25 = vpop.f32.mrb[5].mxu0 }
 0x156   : > { %v545_v26 = vadd.f32 %v1832_v8, %v544_v25  ;;  %v2018_v27 = vpop.f32.mrb[6].mxu0  ;;  %2023 = vmatprep.mubr.msk.bf16.mxu1 %vm481_vm0, %v567_v23 }
 0x157   : > { %v556_v28 = vadd.f32 %v2018_v27, %v1832_v8  ;;  %v547_v29 = vpop.f32.mrb[7].mxu0  ;;  %2024 = vmatmul.mubr.msk.bf16.vlgmr.msra.gmra.mrb[0].mxu1 %vm481_vm0, %v568_v21  ;;  %v565_v31 = vmax.f32 %v553_v24, 0.0 }
 0x158   : > { %v548_v30 = vadd.f32 %v1832_v8, %v547_v29  ;;  %v563_v33 = vmax.f32 %v545_v26, 0.0 }
 0x159   : > { %v566_v32 = vmax.f32 %v556_v28, 0.0 }
 0x15a   : > { %v564_v34 = vmax.f32 %v548_v30, 0.0 }
 0x15b   : > { %v570_v35 = vpack.c.bf16 %v566_v32, %v565_v31 }
 0x15c   : > { %v569_v36 = vpack.c.bf16 %v564_v34, %v563_v33 }
 0x15e   : > { %2027 = vmatprep.mubr.msk.bf16.mxu1 %vm481_vm0, %v569_v36 }
 0x15f   : > { %2028 = vmatmul.mubr.msk.bf16.gmra.mrb[4].mxu1 %vm481_vm0, %v570_v35 }
 0x22a   : > { %v2025_v38 = vpop.f32.mrb[0].mxu1 }
 0x22b   : > { %v649_v39 = vadd.f32 %v2025_v38, %v1843_v37  ;;  %v640_v40 = vpop.f32.mrb[1].mxu1 }
 0x22c   : > { %v641_v41 = vadd.f32 %v1843_v37, %v640_v40  ;;  %v2026_v42 = vpop.f32.mrb[2].mxu1 }
 0x22d   : > { %v673_v43 = vmax.f32 %v649_v39, 0.0  ;;  %v652_v44 = vadd.f32 %v2026_v42, %v1843_v37  ;;  %v643_v45 = vpop.f32.mrb[3].mxu1 }
 0x22e   : > { %v671_v46 = vmax.f32 %v641_v41, 0.0  ;;  %v644_v47 = vadd.f32 %v1843_v37, %v643_v45 }
 0x22f   : > { %v674_v48 = vmax.f32 %v652_v44, 0.0 }
 0x230   : > { %v672_v49 = vmax.f32 %v644_v47, 0.0 }
 0x232   : > { %v2029_v50 = vpop.f32.mrb[4].mxu1  ;;  %682 = sbr.rel (%p1850_p9) target bundleno = 569 (0x239), region = 76 }
 0x233   : > { %v665_v51 = vadd.f32 %v2029_v50, %v1843_v37  ;;  %v656_v52 = vpop.f32.mrb[5].mxu1 }
 0x234   : > { %v657_v53 = vadd.f32 %v1843_v37, %v656_v52  ;;  %v2030_v54 = vpop.f32.mrb[6].mxu1 }
 0x235   : > { %v677_v55 = vmax.f32 %v665_v51, 0.0  ;;  %v668_v56 = vadd.f32 %v2030_v54, %v1843_v37  ;;  %v659_v57 = vpop.f32.mrb[7].mxu1 }
 0x236   : > { %v675_v58 = vmax.f32 %v657_v53, 0.0  ;;  %v660_v59 = vadd.f32 %v1843_v37, %v659_v57 }
 0x237   : > { %v678_v60 = vmax.f32 %v668_v56, 0.0 }
 0x238   : > { %v676_v61 = vmax.f32 %v660_v59, 0.0 }
 0x239 PF: > { %v686_v0 = vmax.f32 %v671_v46, %v675_v58  ;;  %v688_v2 = vmax.f32 %v673_v43, %v677_v55  ;;  %v689_v3 = vmax.f32 %v674_v48, %v678_v60  ;;  %v702_v4 = vadd.f32 %v672_v49, %v671_v46  ;;  %v685_v19 = vld [vmem:[#allocation2] sm:$0x1]  ;;  %v701_v27 = vld [vmem:[#allocation3] sm:$0x1]  ;;  %p1851_p10 = scmp.ne.s32.totalorder %s2470_s16, 1 }
 0x23a   : > { %v687_v1 = vmax.f32 %v672_v49, %v676_v61  ;;  %v2148_v30 = vld [vmem:[#allocation7 + $0x4] ss:$16 sps:$4 sm:$0xff] (!%p1851_p10)   ;;  %v2150_v31 = vld [vmem:[#allocation7 + $0xc] ss:$16 sps:$4 sm:$0xff] (!%p1851_p10)   ;;  %v2497_v32 = vmov (!%p1851_p10), 0  }
 0x23b   : > { %v691_v6 = vmax.f32 %v688_v2, %v689_v3  ;;  %v703_v7 = vadd.f32 %v702_v4, %v673_v43  ;;  %982 = vmatprep.mubr.bf16.mxu0 (!%p1851_p10), %v2497_v32  ;;  %1023 = vmatprep.mubr.bf16.mxu1 (!%p1851_p10), %v2497_v32  ;;  %v2152_v33 = vld [vmem:[#allocation7] ss:$16 sps:$4 sm:$0xff] (!%p1851_p10)   ;;  %v2153_v34 = vld [vmem:[#allocation7 + $0x8] ss:$16 sps:$4 sm:$0xff] (!%p1851_p10)   ;;  %v2154_v35 = vld [vmem:[#allocation7 + $0x24] ss:$16 sps:$4 sm:$0xff] (!%p1851_p10)  }
 0x23c   : > { %v690_v5 = vmax.f32 %v686_v0, %v687_v1  ;;  %950 = vmatprep.subr.bf16.mxu0 (!%p1851_p10), %v2148_v30  ;;  %991 = vmatprep.subr.bf16.mxu1 (!%p1851_p10), %v2150_v31  ;;  %v2156_v36 = vld [vmem:[#allocation7 + $0x2c] ss:$16 sps:$4 sm:$0xff] (!%p1851_p10)   ;;  %v2158_v37 = vld [vmem:[#allocation7 + $0x20] ss:$16 sps:$4 sm:$0xff] (!%p1851_p10)   ;;  %v2159_v38 = vld [vmem:[#allocation7 + $0x28] ss:$16 sps:$4 sm:$0xff] (!%p1851_p10)  }
 0x23d   : > { %v704_v9 = vadd.f32 %v703_v7, %v674_v48  ;;  %951 = vmatpush1.bf16.msra.mxu0 (!%p1851_p10), %v2152_v33  ;;  %992 = vmatpush1.bf16.msra.mxu1 (!%p1851_p10), %v2153_v34  ;;  %v2160_v39 = vld [vmem:[#allocation7 + $0x44] ss:$16 sps:$4 sm:$0xff] (!%p1851_p10)   ;;  %v2162_v40 = vld [vmem:[#allocation7 + $0x4c] ss:$16 sps:$4 sm:$0xff] (!%p1851_p10)   ;;  %v2164_v41 = vld [vmem:[#allocation7 + $0x40] ss:$16 sps:$4 sm:$0xff] (!%p1851_p10)  }
 0x23e   : > { %v692_v8 = vmax.f32 %v690_v5, %v691_v6  ;;  %952 = vmatprep.subr.bf16.mxu0 (!%p1851_p10), %v2154_v35  ;;  %993 = vmatprep.subr.bf16.mxu1 (!%p1851_p10), %v2156_v36  ;;  %v2165_v42 = vld [vmem:[#allocation7 + $0x48] ss:$16 sps:$4 sm:$0xff] (!%p1851_p10)   ;;  %v2166_v43 = vld [vmem:[#allocation7 + $0x64] ss:$16 sps:$4 sm:$0xff] (!%p1851_p10)   ;;  %v2168_v44 = vld [vmem:[#allocation7 + $0x6c] ss:$16 sps:$4 sm:$0xff] (!%p1851_p10)  }
 0x23f   : > { %v705_v11 = vadd.f32 %v704_v9, %v675_v58  ;;  %v2170_v45 = vld [vmem:[#allocation7 + $0x60] ss:$16 sps:$4 sm:$0xff] (!%p1851_p10)   ;;  %v2171_v46 = vld [vmem:[#allocation7 + $0x68] ss:$16 sps:$4 sm:$0xff] (!%p1851_p10)   ;;  %v2172_v47 = vld [vmem:[#allocation7 + $0x84] ss:$16 sps:$4 sm:$0xff] (!%p1851_p10)  }
 0x240   : > { %v693_v10 = vrot.slane %v692_v8, 4  ;;  %v2174_v48 = vld [vmem:[#allocation7 + $0x8c] ss:$16 sps:$4 sm:$0xff] (!%p1851_p10)   ;;  %v2176_v49 = vld [vmem:[#allocation7 + $0x80] ss:$16 sps:$4 sm:$0xff] (!%p1851_p10)  }
 0x241   : > { %v706_v13 = vadd.f32 %v705_v11, %v676_v61  ;;  %953 = vmatpush1.bf16.msra.mxu0 (!%p1851_p10), %v2158_v37  ;;  %994 = vmatpush1.bf16.msra.mxu1 (!%p1851_p10), %v2159_v38  ;;  %v2177_v50 = vld [vmem:[#allocation7 + $0x88] ss:$16 sps:$4 sm:$0xff] (!%p1851_p10)   ;;  %v2178_v51 = vld [vmem:[#allocation7 + $0xa4] ss:$16 sps:$4 sm:$0xff] (!%p1851_p10)   ;;  %v2180_v52 = vld [vmem:[#allocation7 + $0xac] ss:$16 sps:$4 sm:$0xff] (!%p1851_p10)  }
 0x242   : > { %v694_v12 = vmax.f32 %v692_v8, %v693_v10  ;;  %954 = vmatprep.subr.bf16.mxu0 (!%p1851_p10), %v2160_v39  ;;  %995 = vmatprep.subr.bf16.mxu1 (!%p1851_p10), %v2162_v40  ;;  %v2182_v53 = vld [vmem:[#allocation7 + $0xa0] ss:$16 sps:$4 sm:$0xff] (!%p1851_p10)   ;;  %v2183_v54 = vld [vmem:[#allocation7 + $0xa8] ss:$16 sps:$4 sm:$0xff] (!%p1851_p10)   ;;  %v2186_v56 = vld [vmem:[#allocation7 + $0xcc] ss:$16 sps:$4 sm:$0xff] (!%p1851_p10)  }
 0x243   : > { %v707_v15 = vadd.f32 %v706_v13, %v677_v55  ;;  %v2184_v55 = vld [vmem:[#allocation7 + $0xc4] ss:$16 sps:$4 sm:$0xff] (!%p1851_p10)   ;;  %v2188_v57 = vld [vmem:[#allocation7 + $0xc0] ss:$16 sps:$4 sm:$0xff] (!%p1851_p10)   ;;  %v2189_v58 = vld [vmem:[#allocation7 + $0xc8] ss:$16 sps:$4 sm:$0xff] (!%p1851_p10)  }
 0x244   : > { %v695_v14 = vrot.slane %v694_v12, 2  ;;  %v2192_v61 = vld [vmem:[#allocation7 + $0xec] ss:$16 sps:$4 sm:$0xff] (!%p1851_p10)   ;;  %v2194_v62 = vld [vmem:[#allocation7 + $0xe0] ss:$16 sps:$4 sm:$0xff] (!%p1851_p10)  }
 0x245   : > { %v708_v17 = vadd.f32 %v707_v15, %v678_v60  ;;  %955 = vmatpush1.bf16.msra.mxu0 (!%p1851_p10), %v2164_v41  ;;  %996 = vmatpush1.bf16.msra.mxu1 (!%p1851_p10), %v2165_v42  ;;  %v2190_v60 = vld [vmem:[#allocation7 + $0xe4] ss:$16 sps:$4 sm:$0xff] (!%p1851_p10)   ;;  %v2195_v0 = vld [vmem:[#allocation7 + $0xe8] ss:$16 sps:$4 sm:$0xff] (!%p1851_p10)   ;;  %v2201_v2 = vld [vmem:[#allocation4 + $0xc] ss:$16 sps:$4 sm:$0xff] (!%p1851_p10)  }
 0x246   : > { %v696_v16 = vmax.f32 %v694_v12, %v695_v14  ;;  %956 = vmatprep.subr.bf16.mxu0 (!%p1851_p10), %v2166_v43  ;;  %997 = vmatprep.subr.bf16.mxu1 (!%p1851_p10), %v2168_v44  ;;  %v2198_v1 = vld [vmem:[#allocation4 + $0x4] ss:$16 sps:$4 sm:$0xff] (!%p1851_p10)   ;;  %v2196_v4 = vld [vmem:[#allocation4] ss:$16 sps:$4 sm:$0xff] (!%p1851_p10)   ;;  %v2199_v5 = vld [vmem:[#allocation4 + $0x8] ss:$16 sps:$4 sm:$0xff] (!%p1851_p10)  }
 0x247   : > { %v709_v20 = vrot.slane %v708_v17, 4  ;;  %v2204_v6 = vld [vmem:[#allocation4 + $0x24] ss:$16 sps:$4 sm:$0xff] (!%p1851_p10)   ;;  %v2207_v7 = vld [vmem:[#allocation4 + $0x2c] ss:$16 sps:$4 sm:$0xff] (!%p1851_p10)  }
 0x248   : > { %v697_v18 = vrot.slane %v696_v16, 1  ;;  %v2202_v8 = vld [vmem:[#allocation4 + $0x20] ss:$16 sps:$4 sm:$0xff] (!%p1851_p10)   ;;  %v2205_v9 = vld [vmem:[#allocation4 + $0x28] ss:$16 sps:$4 sm:$0xff] (!%p1851_p10)  }
 0x249   : > { %v710_v22 = vadd.f32 %v709_v20, %v708_v17  ;;  %957 = vmatpush1.bf16.msra.mxu0 (!%p1851_p10), %v2170_v45  ;;  %998 = vmatpush1.bf16.msra.mxu1 (!%p1851_p10), %v2171_v46  ;;  %v2210_v10 = vld [vmem:[#allocation4 + $0x44] ss:$16 sps:$4 sm:$0xff] (!%p1851_p10)   ;;  %v2213_v11 = vld [vmem:[#allocation4 + $0x4c] ss:$16 sps:$4 sm:$0xff] (!%p1851_p10)   ;;  %v2208_v12 = vld [vmem:[#allocation4 + $0x40] ss:$16 sps:$4 sm:$0xff] (!%p1851_p10)  }
 0x24a   : > { %v698_v21 = vmax.f32 %v696_v16, %v697_v18  ;;  %958 = vmatprep.subr.bf16.mxu0 (!%p1851_p10), %v2172_v47  ;;  %999 = vmatprep.subr.bf16.mxu1 (!%p1851_p10), %v2174_v48  ;;  %v2211_v13 = vld [vmem:[#allocation4 + $0x48] ss:$16 sps:$4 sm:$0xff] (!%p1851_p10)   ;;  %v2216_v14 = vld [vmem:[#allocation4 + $0x64] ss:$16 sps:$4 sm:$0xff] (!%p1851_p10)   ;;  %v2219_v15 = vld [vmem:[#allocation4 + $0x6c] ss:$16 sps:$4 sm:$0xff] (!%p1851_p10)  }
 0x24b   : > { %v711_v24 = vrot.slane %v710_v22, 2  ;;  %v2214_v16 = vld [vmem:[#allocation4 + $0x60] ss:$16 sps:$4 sm:$0xff] (!%p1851_p10)   ;;  %v2217_v17 = vld [vmem:[#allocation4 + $0x68] ss:$16 sps:$4 sm:$0xff] (!%p1851_p10)  }
 0x24c   : > { %v699_v23 = vmax.f32 %v685_v19, %v698_v21  ;;  %v2222_v18 = vld [vmem:[#allocation4 + $0x84] ss:$16 sps:$4 sm:$0xff] (!%p1851_p10)   ;;  %v2225_v19 = vld [vmem:[#allocation4 + $0x8c] ss:$16 sps:$4 sm:$0xff] (!%p1851_p10)   ;;  %v2220_v20 = vld [vmem:[#allocation4 + $0x80] ss:$16 sps:$4 sm:$0xff] (!%p1851_p10)  }
 0x24d   : > { %v712_v25 = vadd.f32 %v711_v24, %v710_v22  ;;  %959 = vmatpush1.bf16.msra.mxu0 (!%p1851_p10), %v2176_v49  ;;  %1000 = vmatpush1.bf16.msra.mxu1 (!%p1851_p10), %v2177_v50  ;;  %v2223_v21 = vld [vmem:[#allocation4 + $0x88] ss:$16 sps:$4 sm:$0xff] (!%p1851_p10)   ;;  %v2228_v22 = vld [vmem:[#allocation4 + $0xa4] ss:$16 sps:$4 sm:$0xff] (!%p1851_p10)   ;;  %v2226_v24 = vld [vmem:[#allocation4 + $0xa0] ss:$16 sps:$4 sm:$0xff] (!%p1851_p10)  }
 0x24e   : > { %700 = vst [vmem:[#allocation2] sm:$0x1] %v699_v23  ;;  %960 = vmatprep.subr.bf16.mxu0 (!%p1851_p10), %v2178_v51  ;;  %1001 = vmatprep.subr.bf16.mxu1 (!%p1851_p10), %v2180_v52  ;;  %v2231_v23 = vld [vmem:[#allocation4 + $0xac] ss:$16 sps:$4 sm:$0xff] (!%p1851_p10)   ;;  %v2240_v30 = vld [vmem:[#allocation4 + $0xe4] ss:$16 sps:$4 sm:$0xff] (!%p1851_p10)  }
 0x24f   : > { %v713_v26 = vrot.slane %v712_v25, 1  ;;  %720 = sbr.rel (%p1851_p10) target bundleno = 1127 (0x467), region = 80  ;;  %v2243_v31 = vld [vmem:[#allocation4 + $0xec] ss:$16 sps:$4 sm:$0xff] (!%p1851_p10)   ;;  %v2241_v33 = vld [vmem:[#allocation4 + $0xe8] ss:$16 sps:$4 sm:$0xff] (!%p1851_p10)  }
 0x250   : > { %v2244_v36 = vld [vmem:[#allocation9 + $0x40] sm:$0xff] (!%p1851_p10)   ;;  %v2248_v40 = vld [vmem:[#allocation9 + $0x48] sm:$0xff] (!%p1851_p10)   ;;  %v2252_v44 = vld [vmem:[#allocation9 + $0x50] sm:$0xff] (!%p1851_p10)  }
 0x251   : > { %v714_v28 = vadd.f32 %v713_v26, %v712_v25  ;;  %961 = vmatpush1.bf16.msra.mxu0 (!%p1851_p10), %v2182_v53  ;;  %1002 = vmatpush1.bf16.msra.mxu1 (!%p1851_p10), %v2183_v54  ;;  %v2229_v25 = vld [vmem:[#allocation4 + $0xa8] ss:$16 sps:$4 sm:$0xff] (!%p1851_p10)   ;;  %v2234_v26 = vld [vmem:[#allocation4 + $0xc4] ss:$16 sps:$4 sm:$0xff] (!%p1851_p10)  }
 0x252   : > { %962 = vmatprep.subr.bf16.mxu0 (!%p1851_p10), %v2184_v55  ;;  %1003 = vmatprep.subr.bf16.mxu1 (!%p1851_p10), %v2186_v56  ;;  %v2245_v37 = vld [vmem:[#allocation9 + $0xc0] sm:$0xff] (!%p1851_p10)   ;;  %v2249_v41 = vld [vmem:[#allocation9 + $0xc8] sm:$0xff] (!%p1851_p10)   ;;  %v2253_v45 = vld [vmem:[#allocation9 + $0xd0] sm:$0xff] (!%p1851_p10)  }
 0x253   : > { %v715_v29 = vadd.f32 %v714_v28, %v701_v27  ;;  %v2237_v27 = vld [vmem:[#allocation4 + $0xcc] ss:$16 sps:$4 sm:$0xff] (!%p1851_p10)   ;;  %v2232_v28 = vld [vmem:[#allocation4 + $0xc0] ss:$16 sps:$4 sm:$0xff] (!%p1851_p10)  }
 0x254   : > { %v2246_v38 = vld [vmem:[#allocation9] sm:$0xff] (!%p1851_p10)   ;;  %v2250_v42 = vld [vmem:[#allocation9 + $0x8] sm:$0xff] (!%p1851_p10)   ;;  %v2254_v46 = vld [vmem:[#allocation9 + $0x10] sm:$0xff] (!%p1851_p10)  }
 0x255   : > { %716 = vst [vmem:[#allocation3] sm:$0x1] %v715_v29  ;;  %963 = vmatpush1.bf16.msra.mxu0 (!%p1851_p10), %v2188_v57  ;;  %1004 = vmatpush1.bf16.msra.mxu1 (!%p1851_p10), %v2189_v58  ;;  %v2235_v29 = vld [vmem:[#allocation4 + $0xc8] ss:$16 sps:$4 sm:$0xff] (!%p1851_p10)   ;;  %v721_v34 = vld [vmem:[#allocation2] sm:$0x1] (!%p1851_p10) }
 0x256   : > { %964 = vmatprep.subr.bf16.mxu0 %v2190_v60  ;;  %1005 = vmatprep.subr.bf16.mxu1 %v2192_v61  ;;  %v724_v35 = vpack.c.bf16 %v721_v34, %v721_v34  ;;  %v2247_v39 = vld [vmem:[#allocation9 + $0x80] sm:$0xff]   ;;  %v2251_v43 = vld [vmem:[#allocation9 + $0x88] sm:$0xff]   ;;  %v2255_v47 = vld [vmem:[#allocation9 + $0x90] sm:$0xff]  }
 0x257   : > { %v2256_v48 = vld [vmem:[#allocation9 + $0x58] sm:$0xff]   ;;  %v2260_v52 = vld [vmem:[#allocation9 + $0x60] sm:$0xff]   ;;  %v2264_v56 = vld [vmem:[#allocation9 + $0x68] sm:$0xff]  }
 0x258   : > { %v2257_v49 = vld [vmem:[#allocation9 + $0xd8] sm:$0xff]   ;;  %v2261_v53 = vld [vmem:[#allocation9 + $0xe0] sm:$0xff]   ;;  %v2265_v57 = vld [vmem:[#allocation9 + $0xe8] sm:$0xff]  }
 0x259   : > { %965 = vmatpush1.bf16.msra.mxu0 %v2194_v62  ;;  %1006 = vmatpush1.bf16.msra.mxu1 %v2195_v0  ;;  %v2258_v50 = vld [vmem:[#allocation9 + $0x18] sm:$0xff]   ;;  %v2262_v54 = vld [vmem:[#allocation9 + $0x20] sm:$0xff]   ;;  %v2266_v58 = vld [vmem:[#allocation9 + $0x28] sm:$0xff]  }
 0x25a   : > { %1192 = vmatprep.subr.bf16.mxu0 %v2198_v1  ;;  %1233 = vmatprep.subr.bf16.mxu1 %v2201_v2  ;;  %v2259_v51 = vld [vmem:[#allocation9 + $0x98] sm:$0xff]   ;;  %v2263_v55 = vld [vmem:[#allocation9 + $0xa0] sm:$0xff]   ;;  %v2268_v60 = vld [vmem:[#allocation9 + $0x70] sm:$0xff]  }
 0x25b   : > { %v2269_v61 = vld [vmem:[#allocation9 + $0xf0] sm:$0xff]   ;;  %v2272_v0 = vld [vmem:[#allocation9 + $0x78] sm:$0xff]  }
 0x25c   : > { %v722_v59 = vld [vmem:[#allocation3] sm:$0x1]  ;;  %v2270_v62 = vld [vmem:[#allocation9 + $0x30] sm:$0xff]  }
 0x25d   : > { %v723_v63 = vmul.f32 0.0078125, %v722_v59  ;;  %v2267_v59 = vld [vmem:[#allocation9 + $0xa8] sm:$0xff]   ;;  %v2273_v1 = vld [vmem:[#allocation9 + $0xf8] sm:$0xff]  }
 0x25e   : > { %v2274_v2 = vld [vmem:[#allocation9 + $0x38] sm:$0xff]  }
 0x25f   : > { %v757_v3 = vpack.c.bf16 %v723_v63, %v723_v63  ;;  %v2271_v63 = vld [vmem:[#allocation9 + $0xb0] sm:$0xff]  }
 0x261   : > { %983 = vmatmul.mubr.bf16.vlgmr.msra.gmra.mrb[0].mxu0 %v757_v3  ;;  %1024 = vmatmul.mubr.bf16.vlgmr.msra.gmra.mrb[0].mxu1 %v757_v3  ;;  %v2275_v3 = vld [vmem:[#allocation9 + $0xb8] sm:$0xff]  }
 0x262   : > { %1193 = vmatpush1.bf16.msra.mxu0 %v2196_v4  ;;  %1234 = vmatpush1.bf16.msra.mxu1 %v2199_v5 }
 0x263   : > { %1194 = vmatprep.subr.bf16.mxu0 %v2204_v6  ;;  %1235 = vmatprep.subr.bf16.mxu1 %v2207_v7 }
 0x264   : > { %1224 = vmatprep.mubr.bf16.mxu0 %v2497_v32  ;;  %1265 = vmatprep.mubr.bf16.mxu1 %v2497_v32  ;;  %v2238_v32 = vld [vmem:[#allocation4 + $0xe0] ss:$16 sps:$4 sm:$0xff]  }
 0x266   : > { %1195 = vmatpush1.bf16.msra.mxu0 %v2202_v8  ;;  %1236 = vmatpush1.bf16.msra.mxu1 %v2205_v9 }
 0x267   : > { %1196 = vmatprep.subr.bf16.mxu0 %v2210_v10  ;;  %1237 = vmatprep.subr.bf16.mxu1 %v2213_v11 }
 0x26a   : > { %1197 = vmatpush1.bf16.msra.mxu0 %v2208_v12  ;;  %1238 = vmatpush1.bf16.msra.mxu1 %v2211_v13  ;;  %v1276_v12 = vlaneseq }
 0x26b   : > { %1198 = vmatprep.subr.bf16.mxu0 %v2216_v14  ;;  %1239 = vmatprep.subr.bf16.mxu1 %v2219_v15 }
 0x26c   : > { %v1277_v13 = vshrl.u32 %v1276_v12, 7 }
 0x26e   : > { %1199 = vmatpush1.bf16.msra.mxu0 %v2214_v16  ;;  %1240 = vmatpush1.bf16.msra.mxu1 %v2217_v17  ;;  %v1278_v14 = vsub.s32 0, %v1277_v13  ;;  %v1286_v15 = vsub.s32 2, %v1277_v13  ;;  %v1274_v16 = vld [vmem:[%s2856_s7] sm:$0xf]  ;;  %v1282_v17 = vsub.s32 1, %v1277_v13 }
 0x26f   : > { %1200 = vmatprep.subr.bf16.mxu0 %v2222_v18  ;;  %1241 = vmatprep.subr.bf16.mxu1 %v2225_v19  ;;  %v1290_v18 = vsub.s32 3, %v1277_v13 }
 0x270   : > { %v1279_v19 = vrot.slane %v1274_v16, %v1278_v14 }
 0x272   : > { %1201 = vmatpush1.bf16.msra.mxu0 %v2220_v20  ;;  %1242 = vmatpush1.bf16.msra.mxu1 %v2223_v21  ;;  %v1287_v20 = vrot.slane %v1274_v16, %v1286_v15 }
 0x273   : > { %1202 = vmatprep.subr.bf16.mxu0 %v2228_v22  ;;  %1243 = vmatprep.subr.bf16.mxu1 %v2231_v23  ;;  %v1283_v23 = vrot.slane %v1274_v16, %v1282_v17 }
 0x276   : > { %1203 = vmatpush1.bf16.msra.mxu0 %v2226_v24  ;;  %1244 = vmatpush1.bf16.msra.mxu1 %v2229_v25  ;;  %v1291_v24 = vrot.slane %v1274_v16, %v1290_v18 }
 0x277   : > { %1204 = vmatprep.subr.bf16.mxu0 %v2234_v26  ;;  %1245 = vmatprep.subr.bf16.mxu1 %v2237_v27 }
 0x27a   : > { %1205 = vmatpush1.bf16.msra.mxu0 %v2232_v28  ;;  %1246 = vmatpush1.bf16.msra.mxu1 %v2235_v29 }
 0x27b   : > { %1206 = vmatprep.subr.bf16.mxu0 %v2240_v30  ;;  %1247 = vmatprep.subr.bf16.mxu1 %v2243_v31 }
 0x27e   : > { %1207 = vmatpush1.bf16.msra.mxu0 %v2238_v32  ;;  %1248 = vmatpush1.bf16.msra.mxu1 %v2241_v33 }
 0x27f   : > { %1963 = vmatprep.subr.bf16.mxu0 %v2244_v36  ;;  %1985 = vmatprep.subr.bf16.mxu1 %v2245_v37 }
 0x281   : > { %1225 = vmatmul.mubr.bf16.vlgmr.msra.gmra.mrb[4].mxu0 %v724_v35  ;;  %1266 = vmatmul.mubr.bf16.vlgmr.msra.gmra.mrb[4].mxu1 %v724_v35 }
 0x282   : > { %1964 = vmatpush3.bf16.msra.mxu0 %v2246_v38  ;;  %1986 = vmatpush3.bf16.msra.mxu1 %v2247_v39 }
 0x283   : > { %1965 = vmatprep.subr.bf16.mxu0 %v2248_v40  ;;  %1987 = vmatprep.subr.bf16.mxu1 %v2249_v41 }
 0x286   : > { %1966 = vmatpush3.bf16.msra.mxu0 %v2250_v42  ;;  %1988 = vmatpush3.bf16.msra.mxu1 %v2251_v43 }
 0x287   : > { %1967 = vmatprep.subr.bf16.mxu0 %v2252_v44  ;;  %1989 = vmatprep.subr.bf16.mxu1 %v2253_v45 }
 0x28a   : > { %1968 = vmatpush3.bf16.msra.mxu0 %v2254_v46  ;;  %1990 = vmatpush3.bf16.msra.mxu1 %v2255_v47 }
 0x28b   : > { %1969 = vmatprep.subr.bf16.mxu0 %v2256_v48  ;;  %1991 = vmatprep.subr.bf16.mxu1 %v2257_v49 }
 0x28e   : > { %1970 = vmatpush3.bf16.msra.mxu0 %v2258_v50  ;;  %1992 = vmatpush3.bf16.msra.mxu1 %v2259_v51 }
 0x28f   : > { %1971 = vmatprep.subr.bf16.mxu0 %v2260_v52  ;;  %1993 = vmatprep.subr.bf16.mxu1 %v2261_v53 }
 0x292   : > { %1972 = vmatpush3.bf16.msra.mxu0 %v2262_v54  ;;  %1994 = vmatpush3.bf16.msra.mxu1 %v2263_v55 }
 0x293   : > { %1973 = vmatprep.subr.bf16.mxu0 %v2264_v56  ;;  %1995 = vmatprep.subr.bf16.mxu1 %v2265_v57 }
 0x296   : > { %1974 = vmatpush3.bf16.msra.mxu0 %v2266_v58  ;;  %1996 = vmatpush3.bf16.msra.mxu1 %v2267_v59 }
 0x297   : > { %1975 = vmatprep.subr.bf16.mxu0 %v2268_v60  ;;  %1997 = vmatprep.subr.bf16.mxu1 %v2269_v61 }
 0x29a   : > { %1976 = vmatpush3.bf16.msra.mxu0 %v2270_v62  ;;  %1998 = vmatpush3.bf16.msra.mxu1 %v2271_v63 }
 0x29b   : > { %1977 = vmatprep.subr.bf16.mxu0 %v2272_v0  ;;  %1999 = vmatprep.subr.bf16.mxu1 %v2273_v1 }
 0x29e   : > { %1978 = vmatpush3.bf16.msra.mxu0 %v2274_v2  ;;  %2000 = vmatpush3.bf16.msra.mxu1 %v2275_v3 }
 0x334   : > { %v984_v4 = vpop.f32.mrb[0].mxu0  ;;  %v1025_v5 = vpop.f32.mrb[0].mxu1 }
 0x335   : > { %v986_v6 = vpop.f32.mrb[1].mxu0  ;;  %v1027_v7 = vpop.f32.mrb[1].mxu1 }
 0x336   : > { %v988_v8 = vpop.f32.mrb[2].mxu0  ;;  %v1029_v9 = vpop.f32.mrb[2].mxu1 }
 0x337   : > { %v989_v10 = vpop.f32.mrb[3].mxu0  ;;  %v1030_v11 = vpop.f32.mrb[3].mxu1 }
 0x354   : > { %v1226_v21 = vpop.f32.mrb[4].mxu0  ;;  %v1267_v22 = vpop.f32.mrb[4].mxu1 }
 0x355   : > { %v1227_v25 = vadd.f32 %v1226_v21, %v984_v4  ;;  %v1268_v26 = vadd.f32 %v1267_v22, %v1025_v5  ;;  %v1228_v27 = vpop.f32.mrb[5].mxu0  ;;  %v1269_v28 = vpop.f32.mrb[5].mxu1 }
 0x356   : > { %v1229_v29 = vadd.f32 %v1228_v27, %v986_v6  ;;  %v1270_v30 = vadd.f32 %v1269_v28, %v1027_v7  ;;  %v1230_v31 = vpop.f32.mrb[6].mxu0  ;;  %v1271_v32 = vpop.f32.mrb[6].mxu1 }
 0x357   : > { %v2761_v33 = vadd.f32 %v1279_v19, %v1227_v25  ;;  %v2763_v34 = vadd.f32 %v1287_v20, %v1268_v26  ;;  %v1231_v35 = vpop.f32.mrb[7].mxu0  ;;  %v1272_v36 = vpop.f32.mrb[7].mxu1 }
 0x358   : > { %v2765_v37 = vadd.f32 %v1283_v23, %v1229_v29  ;;  %v2767_v38 = vadd.f32 %v1291_v24, %v1270_v30 }
 0x359   : > { %v1304_v39 = vmin.f32 %v2761_v33, 20.0  ;;  %v1306_v40 = vmin.f32 %v2763_v34, 20.0  ;;  %vm1300_vm1 = vcmp.gt.f32.partialorder %v2761_v33, 20.0  ;;  %vm1302_vm2 = vcmp.gt.f32.partialorder %v2763_v34, 20.0 }
 0x35a   : > { %v1305_v41 = vmin.f32 %v2765_v37, 20.0  ;;  %v1307_v42 = vmin.f32 %v2767_v38, 20.0  ;;  %vm1301_vm3 = vcmp.gt.f32.partialorder %v2765_v37, 20.0  ;;  %vm1303_vm8 = vcmp.gt.f32.partialorder %v2767_v38, 20.0 }
 0x35b   : > { %v1308_v43 = vmul.f32 1.442695, %v1304_v39  ;;  %v1312_v44 = vmul.f32 1.442695, %v1306_v40 }
 0x35c   : > { %v1310_v45 = vmul.f32 1.442695, %v1305_v41  ;;  %v1314_v46 = vmul.f32 1.442695, %v1307_v42 }
 0x35d   : > { %2276 = vpow2.f32 %v1308_v43 }
 0x35e   : > { %2278 = vpow2.f32 %v1312_v44 }
 0x35f   : > { %2280 = vpow2.f32 %v1310_v45 }
 0x360   : > { %2282 = vpow2.f32 %v1314_v46 }
 0x367   : > { %v2277_v47 = vpop.eup %2276 }
 0x368   : > { %v2279_v48 = vpop.eup %2278  ;;  %v1316_v49 = vadd.f32 1.0, %v2277_v47  ;;  %v1319_v55 = vmul.f32 -0.5, %v2277_v47  ;;  %v1322_v60 = vand.u32 2147483647, %v2277_v47 }
 0x369   : > { %v2281_v50 = vpop.eup %2280  ;;  %v1334_v51 = vadd.f32 1.0, %v2279_v48  ;;  %v1337_v56 = vmul.f32 -0.5, %v2279_v48  ;;  %v1340_v62 = vand.u32 2147483647, %v2279_v48 }
 0x36a   : > { %v2283_v52 = vpop.eup %2282  ;;  %2284 = vlog2.f32 %v1316_v49  ;;  %v1325_v53 = vadd.f32 1.0, %v2281_v50  ;;  %v1328_v57 = vmul.f32 -0.5, %v2281_v50  ;;  %v1320_v59 = vadd.f32 1.0, %v1319_v55 }
 0x36b   : > { %2286 = vlog2.f32 %v1334_v51  ;;  %v1343_v54 = vadd.f32 1.0, %v2283_v52  ;;  %v1346_v58 = vmul.f32 -0.5, %v2283_v52  ;;  %v1338_v61 = vadd.f32 1.0, %v1337_v56 }
 0x36c   : > { %2288 = vlog2.f32 %v1325_v53  ;;  %v1329_v63 = vadd.f32 1.0, %v1328_v57  ;;  %v1331_v1 = vand.u32 2147483647, %v2281_v50  ;;  %v1321_v5 = vmul.f32 %v2277_v47, %v1320_v59 }
 0x36d   : > { %2290 = vlog2.f32 %v1343_v54  ;;  %v1347_v2 = vadd.f32 1.0, %v1346_v58  ;;  %vm1323_vm4 = vcmp.lt.f32.partialorder %v1322_v60, 0.0004427343  ;;  %v1339_v8 = vmul.f32 %v2279_v48, %v1338_v61 }
 0x36e   : > { %v1349_v9 = vand.u32 2147483647, %v2283_v52  ;;  %vm1341_vm5 = vcmp.lt.f32.partialorder %v1340_v62, 0.0004427343  ;;  %v1330_v12 = vmul.f32 %v2281_v50, %v1329_v63  ;;  %vm1332_vm6 = vcmp.lt.f32.partialorder %v1331_v1, 0.0004427343 }
 0x36f   : > { %v1348_v16 = vmul.f32 %v2283_v52, %v1347_v2 }
 0x370   : > { %vm1350_vm7 = vcmp.lt.f32.partialorder %v1349_v9, 0.0004427343 }
 0x374   : > { %v2285_v0 = vpop.eup %2284 }
 0x375   : > { %v2287_v3 = vpop.eup %2286  ;;  %v1318_v4 = vmul.f32 0.6931472, %v2285_v0 }
 0x376   : > { %v2289_v6 = vpop.eup %2288  ;;  %v1336_v7 = vmul.f32 0.6931472, %v2287_v3 }
 0x377   : > { %v1324_v10 = vsel %vm1323_vm4, %v1321_v5, %v1318_v4  ;;  %v1327_v11 = vmul.f32 0.6931472, %v2289_v6  ;;  %v2291_v13 = vpop.eup %2290 }
 0x378   : > { %v1352_v14 = vsel %vm1300_vm1, %v2761_v33, %v1324_v10  ;;  %v1342_v15 = vsel %vm1341_vm5, %v1339_v8, %v1336_v7  ;;  %v1345_v19 = vmul.f32 0.6931472, %v2291_v13 }
 0x379   : > { %2292 = vtanh.f32 %v1352_v14  ;;  %v1354_v17 = vsel %vm1302_vm2, %v2763_v34, %v1342_v15  ;;  %v1333_v18 = vsel %vm1332_vm6, %v1330_v12, %v1327_v11 }
 0x37a   : > { %2294 = vtanh.f32 %v1354_v17  ;;  %v1353_v20 = vsel %vm1301_vm3, %v2765_v37, %v1333_v18  ;;  %v1351_v21 = vsel %vm1350_vm7, %v1348_v16, %v1345_v19 }
 0x37b   : > { %2296 = vtanh.f32 %v1353_v20  ;;  %v1355_v22 = vsel %vm1303_vm8, %v2767_v38, %v1351_v21 }
 0x37c   : > { %2298 = vtanh.f32 %v1355_v22 }
 0x383   : > { %v2293_v23 = vpop.eup %2292 }
 0x384   : > { %v2295_v24 = vpop.eup %2294  ;;  %v1360_v26 = vmul.f32 %v2293_v23, %v2761_v33  ;;  %v1432_v33 = vld [vmem:[%s2858_s9] sm:$0x1] }
 0x385   : > { %v2297_v25 = vpop.eup %2296  ;;  %v1362_v29 = vmul.f32 %v2295_v24, %v2763_v34 }
 0x386   : > { %v1361_v27 = vmul.f32 %v2297_v25, %v2765_v37  ;;  %v2299_v28 = vpop.eup %2298  ;;  %v1364_v32 = vpack.c.bf16 %v1360_v26, %v1360_v26 }
 0x387   : > { %v1363_v31 = vmul.f32 %v2299_v28, %v2767_v38  ;;  %v1366_v36 = vpack.c.bf16 %v1362_v29, %v1362_v29 }
 0x388   : > { %v1365_v30 = vpack.c.bf16 %v1361_v27, %v1361_v27 }
 0x389   : > { %v1367_v35 = vpack.c.bf16 %v1363_v31, %v1363_v31 }
 0x38a   : > { %1657 = vmatprep.mubr.bf16.mxu0 %v1365_v30 }
 0x38b   : > { %1658 = vmatmul.mubr.bf16.vlgmr.msra.gmra.mrb[8].mxu0 %v1364_v32  ;;  %1697 = vmatprep.mubr.bf16.mxu1 %v1367_v35 }
 0x38c   : > { %1698 = vmatmul.mubr.bf16.vlgmr.msra.gmra.mrb[8].mxu1 %v1366_v36 }
 0x45e   : > { %v1979_v39 = vpop.f32.mrb[8].mxu0 }
 0x45f   : > { %v1980_v37 = vpop.f32.mrb[9].mxu0  ;;  %v2001_v40 = vpop.f32.mrb[8].mxu1 }
 0x460   : > { %v1981_v41 = vadd.f32 %v1980_v37, %v1979_v39  ;;  %v1982_v34 = vpop.f32.mrb[10].mxu0  ;;  %v2002_v42 = vpop.f32.mrb[9].mxu1 }
 0x461   : > { %v1983_v43 = vpop.f32.mrb[11].mxu0  ;;  %v2003_v44 = vadd.f32 %v2002_v42, %v2001_v40  ;;  %v2004_v45 = vpop.f32.mrb[10].mxu1 }
 0x462   : > { %v1660_v38 = vadd.f32 %v1981_v41, %v1432_v33  ;;  %v2005_v46 = vpop.f32.mrb[11].mxu1 }
 0x464   : > { %v1700_v47 = vadd.f32 %v2003_v44, %v1660_v38 }
 0x466   : > { %1705 = vst [vmem:[%s2750_s28] sm:$0x1] %v1700_v47 }
 0x467 PF: > { %s2894_s19 = sld [smem:[#allocation20_spill]]  ;;  %s1948_s21 = sshll.u32 %s2474_s17, 4 }
 0x468   : > { %s2895_s11 = sld [smem:[#allocation24_spill]]  ;;  %s1719_s18 = sshll.u32 %s2750_s28, 4  ;;  %s1720_s18 = int_to_ptr.vmem [resolvable:$true] %s1719_s18 }
 0x469   : > { %s1707_s29 = scalar_lea.sflag [#allocation6], %s417_s12  ;;  %s2384_s22 = scalar_lea.vmem %s1720_s18, 16 }
 0x46a   : > { %p2385_p13 = scmp.ne.s32.totalorder %s1720_s18, %s2384_s22  ;;  %s2498_s15 = smov [#allocation10]  }
 0x46b   : > { %s2388_s10 = sshll.u32 %s2498_s15, 4  ;;  %s2389_s10 = int_to_ptr.vmem [resolvable:$false] %s2388_s10 }
 0x46c   : > { %s2390_s27 = scalar_lea.vmem %s2389_s10, 32  ;;  %p2391_p6 = scmp.lt.s32.totalorder %s1720_s18, %s2389_s10 }
 0x46d   : > { %p2896_p1 = scmp.ne.s32.totalorder %s2894_s19, 0  ;;  %p2392_p7 = scmp.lt.s32.totalorder %s2390_s27, %s2384_s22 }
 0x46e   : > { %s2799_s23 = scalar_lea.hbm %s2895_s11, %s1948_s21 }
 0x46f   : > { %p2386_p4 = pnand %p2385_p13, %p2896_p1  ;;  %p2393_p8 = por %p2392_p7, %p2391_p6 }
 0x471   : > { %p2387_p5 = pneg %p2386_p4 }
 0x473   : > { %p2394_p11 = pnand %p2393_p8, %p2387_p5 }
 0x475   : > { %2397 = shalt.err (!%p2394_p11)
}
 0x476   : > { %s2398_s17 = scalar_lea.hbm %s2799_s23, 16  ;;  %s2402_s28 = scalar_lea.hbm %s2895_s11, 32 }
 0x477   : > { %p2399_p12 = scmp.ne.s32.totalorder %s2799_s23, %s2398_s17  ;;  %p2403_p0 = scmp.lt.u32.totalorder %s2799_s23, %s2895_s11 }
 0x478   : > { %p2404_p9 = scmp.lt.u32.totalorder %s2402_s28, %s2398_s17  ;;  %p2406_p13 = scmp.lt.u32.totalorder %s2398_s17, %s2799_s23 }
 0x479   : > { %p2400_p3 = pnand %p2399_p12, %p2896_p1 }
 0x47a   : > { %p2405_p10 = por %p2404_p9, %p2403_p0 }
 0x47b   : > { %p2401_p2 = pneg %p2400_p3 }
 0x47c   : > { %p2407_p4 = por %p2406_p13, %p2405_p10 }
 0x47e   : > { %p2408_p5 = pnand %p2407_p4, %p2401_p2 }
 0x480   : > { %2411 = shalt.err (!%p2408_p5)
}
 0x481   : > { %2043 = dma.vmem_to_hbm [thread:$0]  (%p2896_p1), %s1720_s18, 16, %s2799_s23, %s1707_s29  }
 0x482 PF: > { %s2897_s20 = sld [smem:[#allocation18_spill]]  ;;  %s2898_s26 = sld [smem:[#allocation14_spill]] }
 0x483   : > { %s2899_s21 = sld [smem:[#allocation22_spill]] }
 0x488   : > { %p2065_p6 = scmp.ge.s32.totalorder %s2897_s20, 2  ;;  %s1731_s30 = sand.u32 1, %s2898_s26  }
 0x489   : > { %p2900_p7 = scmp.ne.s32.totalorder %s2899_s21, 0  ;;  %s1732_s24 = scalar_lea.sflag [#allocation6], %s1731_s30 }
 0x48b   : > { %p2056_p8 = pnand %p2065_p6, %p2900_p7 }
 0x48d   : > { %2453 = dma.done.wait (!%p2056_p8), %s1732_s24, 16  }
 0x48e   : > { %2455 = vsyncadd (!%p2056_p8), %s1732_s24, 4294967280  ;;  %s25_s20 = sadd.s32 1, %s2897_s20   ;;  %s2901_s22 = sld [smem:[#allocation15_spill]] }
 0x48f   : > { %p22_p11 = scmp.ge.s32.totalorder %s25_s20, 6   ;;  %s2902_s15 = sld [smem:[#allocation23_spill]] }
 0x490   : > { %s2903_s16 = sld [smem:[#allocation16_spill]]  ;;  %s2904_s17 = sld [smem:[#allocation17_spill]] }
 0x491   : > { %s2905_s18 = sld [smem:[#allocation19_spill]]  ;;  %s2906_s19 = sld [smem:[#allocation21_spill]] }
 0x492   : > { %s2907_s13 = smov %s2462_s14  ;;  %24 = sbr.rel (!%p22_p11) target bundleno = 9 (0x9), region = 116 }
 0x494   : > { %s2908_s14 = smov %s2901_s22 }
 0x499   :  { %1736 = vsyncpa [#allocation5], 1 }
 0x49a   :  { %1738 = vsyncpa [#allocation5 + $0x1], 1 }
 0x49b   :  { %1739 = vsyncpa [#allocation8], 1 }
 0x49c   :  { %1740 = vsyncpa [#allocation6], 1 }
 0x49d   :  { %1742 = vsyncpa [#allocation6 + $0x1], 1 }

</bundles_post_ra>
